<compile_context>
chip_gen: v5e
topology: v5e:2x2
jax: 0.10.0
libtpu: 0.0.40
codegen_flags: <defaults>
</compile_context>

<pallas_src>
import functools
import math

import jax
import jax.numpy as jnp
from jax.experimental import pallas as pl
from jax.experimental.pallas import tpu as pltpu


def _round_up(x, m):
    return ((x + m - 1) // m) * m


def _vmem_tile_bytes(shape, dtype):
    """Bytes a tensor of `shape` occupies in VMEM after (sublane, lane) padding."""
    itemsize = jnp.dtype(dtype).itemsize
    sublane = 8 * max(1, 4 // itemsize)          # 8 for f32, 16 for bf16
    dims = list(shape) if len(shape) >= 2 else [1] + list(shape)
    dims[-1] = _round_up(dims[-1], 128)
    dims[-2] = _round_up(dims[-2], sublane)
    n = 1
    for d in dims:
        n *= int(d)
    return n * itemsize


def _stack_kernel_factory(num_layers, edge_type_num, n_nodes, in_features,
                          units_pad, compute_dtype):
    """units_pad: per-layer output widths, each already a multiple of 128."""
    E, N, F = edge_type_num, n_nodes, in_features

    def kernel(*refs):
        n_ref, adj_ref = refs[0], refs[1]
        out_ref = refs[-1]
        w_refs = refs[2:-1]
        Bt = n_ref.shape[0]

        n_flat = n_ref[...].reshape(Bt * N, F)          # [Bt*N, F]  (compute dtype)
        adj = adj_ref[...]                              # [Bt, E, N, N] (compute dtype)

        hidden = None                                   # [Bt*N, U_prev_pad]
        out = None
        idx = 0
        for l in range(num_layers):
            U = units_pad[l]
            if l == 0:
                w, b = w_refs[idx][...], w_refs[idx + 1][...]
                idx += 2
                h_all = jnp.dot(n_flat, w, preferred_element_type=jnp.float32)
            else:
                wn, wh = w_refs[idx][...], w_refs[idx + 1][...]
                b = w_refs[idx + 2][...]
                idx += 3
                h_all = (jnp.dot(n_flat, wn, preferred_element_type=jnp.float32)
                         + jnp.dot(hidden, wh, preferred_element_type=jnp.float32))
            # one bias add for all E edge linears + linear_2 (f32 accumulation)
            h_all = (h_all + b).reshape(Bt, N, (E + 1) * U)

            # column layout: [edge 0 | edge 1 | ... | edge E-1 | linear_2];
            # every block is U (multiple of 128) wide -> lane-aligned slices.
            out_sum = h_all[:, :, E * U:]                          # linear_2, f32
            h_edges = h_all[:, :, :E * U].astype(compute_dtype)    # MXU operand
            for e in range(E):
                out_sum = out_sum + jnp.einsum(
                    'bnm,bmu->bnu', adj[:, e],
                    h_edges[:, :, e * U:(e + 1) * U],
                    preferred_element_type=jnp.float32)
            out = jnp.tanh(out_sum)                                # [Bt, N, U] f32
            hidden = out.reshape(Bt * N, U).astype(compute_dtype)

        out_ref[...] = out.astype(out_ref.dtype)

    return kernel


def _pack_layer(w_adj, b_adj, w2, b2, u_pad):
    """Pack E edge linears + linear_2 into one weight/bias.  Column layout:
    [edge 0 | ... | edge E-1 | linear_2], each block zero-padded U -> u_pad."""
    E, _, U = w_adj.shape
    pad = u_pad - U
    if pad:
        w_adj = jnp.pad(w_adj, ((0, 0), (0, 0), (0, pad)))
        b_adj = jnp.pad(b_adj, ((0, 0), (0, pad)))
        w2 = jnp.pad(w2, ((0, 0), (0, pad)))
        b2 = jnp.pad(b2, ((0, 0), (0, pad)))
    w_cat = jnp.concatenate([w_adj[e] for e in range(E)] + [w2], axis=1)
    b_cat = jnp.concatenate([b_adj[e] for e in range(E)] + [b2[0]],
                            axis=0).reshape(1, -1)
    return w_cat, b_cat


def _choose_bt(batch, step_bytes_fn, budget):
    """Largest divisor of batch fitting the VMEM budget; keeps >=2 grid steps
    when batch >= 2 so both v7x TensorCores get work (harmless on 1-TC chips)."""
    min_steps = 2 if batch >= 2 else 1
    best = 1
    for d in range(1, batch + 1):
        if batch % d:
            continue
        if batch // d < min_steps:
            continue
        if step_bytes_fn(d) <= budget:
            best = max(best, d)
    return best


def multi_graph_conv_forward(params, n_tensor, adj_tensor, h_tensor=None, *,
                             compute_dtype=jnp.bfloat16):
    """MultiGraphConvolutionLayers.forward (with_features=False, dropout=0,
    activation=tanh) as a single fused Pallas kernel, gridded over batch tiles."""
    if h_tensor is not None:
        # TODO(synk): initial h_tensor / with_features path not supported in the
        # fused kernel; the reference configuration only uses h_tensor=None.
        raise NotImplementedError("h_tensor input is not supported")

    B, N, F = n_tensor.shape
    E = adj_tensor.shape[1]
    num_layers = len(params)
    units = [int(w2.shape[1]) for (_, _, w2, _) in params]
    # Lane-pad every layer output (not just the last) -> lane-dense intermediates.
    units_pad = [_round_up(u, 128) for u in units]
    u_out = units_pad[-1]

    # bf16 MXU operands (casts fuse with upstream producers); f32 acc in-kernel.
    n_in = n_tensor.astype(compute_dtype)
    adj_in = adj_tensor.astype(compute_dtype)        # native [B, E, N, N] layout

    # Pack / split per-layer weights at trace time.
    weight_args = []
    for l, (w_adj, b_adj, w2, b2) in enumerate(params):
        w_cat, b_cat = _pack_layer(w_adj, b_adj, w2, b2, units_pad[l])
        b_cat = b_cat.astype(jnp.float32)            # bias added in f32
        if l == 0:
            weight_args += [w_cat.astype(compute_dtype), b_cat]
        else:
            u_prev, u_prev_pad = units[l - 1], units_pad[l - 1]
            wn = w_cat[:F]
            wh = w_cat[F:]
            # zero rows for the (zero) padded hidden columns of the previous layer
            wh = jnp.pad(wh, ((0, u_prev_pad - u_prev), (0, 0)))
            weight_args += [wn.astype(compute_dtype),
                            wh.astype(compute_dtype), b_cat]

    # ---- tile-size (Bt) selection with full, padded VMEM accounting ----------
    try:
        vmem_cap = int(pltpu.get_tpu_info().vmem_capacity_bytes)
    except Exception:
        vmem_cap = 64 << 20                          # conservative (v7x per-TC)
    vmem_limit = int(vmem_cap * 3 // 4)              # raise the scoped limit
    step_budget = vmem_limit // 2                    # headroom for compiler temps

    def step_bytes(bt):
        tot = 2 * _vmem_tile_bytes((bt * N, F), compute_dtype)        # n   (2 bufs)
        tot += 2 * _vmem_tile_bytes((bt * E * N, N), compute_dtype)   # adj (2 bufs)
        tot += 2 * _vmem_tile_bytes((bt * N, u_out), jnp.float32)     # out (2 bufs)
        tot += 2 * sum(_vmem_tile_bytes(w.shape, w.dtype) for w in weight_args)
        inter = 0
        for u in units_pad:
            rows = bt * N
            layer = _vmem_tile_bytes((rows, (E + 1) * u), jnp.float32)   # h_all
            layer += _vmem_tile_bytes((rows, E * u), compute_dtype)      # h_edges
            layer += 2 * _vmem_tile_bytes((rows, u), jnp.float32)        # out_sum/out
            layer += _vmem_tile_bytes((rows, u), compute_dtype)          # hidden
            inter = max(inter, layer)
        return tot + inter

    bt = _choose_bt(B, step_bytes, step_budget)
    grid = (B // bt,)

    kernel = _stack_kernel_factory(num_layers, E, N, F, tuple(units_pad),
                                   compute_dtype)

    in_specs = [
        pl.BlockSpec((bt, N, F), lambda b: (b, 0, 0)),
        pl.BlockSpec((bt, E, N, N), lambda b: (b, 0, 0, 0)),
    ]
    for w in weight_args:
        in_specs.append(pl.BlockSpec(w.shape, lambda b: (0, 0)))
    out_specs = pl.BlockSpec((bt, N, u_out), lambda b: (b, 0, 0))

    # Advisory cost estimate for XLA's scheduler.
    flops = 0
    transcendentals = 0
    for l in range(num_layers):
        din = F if l == 0 else F + units_pad[l - 1]
        flops += 2 * B * N * din * (E + 1) * units_pad[l]     # fused linears
        flops += 2 * B * E * N * N * units_pad[l]             # adjacency matmuls
        transcendentals += B * N * units_pad[l]               # tanh
    bytes_accessed = (int(n_in.size) * n_in.dtype.itemsize
                      + int(adj_in.size) * adj_in.dtype.itemsize
                      + B * N * u_out * 4
                      + sum(int(w.size) * w.dtype.itemsize for w in weight_args))

    out = pl.pallas_call(
        kernel,
        out_shape=jax.ShapeDtypeStruct((B, N, u_out), jnp.float32),
        grid=grid,
        in_specs=in_specs,
        out_specs=out_specs,
        compiler_params=pltpu.CompilerParams(
            dimension_semantics=("parallel",),
            vmem_limit_bytes=vmem_limit),
        cost_estimate=pl.CostEstimate(
            flops=flops, transcendentals=transcendentals,
            bytes_accessed=bytes_accessed),
    )(n_in, adj_in, *weight_args)

    if u_out != units[-1]:
        out = out[..., :units[-1]]
    return out


def init_graph_convolution_params(key, in_features, graph_conv_units, edge_type_num):
    """Mimics nn.Linear default init (uniform +-1/sqrt(fan_in)); weights stored
    already transposed to [in, out] for the kernel.  with_features=False path."""
    in_units = [u + in_features for u in graph_conv_units]
    in_dims = [in_features] + in_units[:-1]
    params = []
    for u0, u1 in zip(in_dims, graph_conv_units):
        k = 1.0 / math.sqrt(u0)
        key, k1, k2, k3, k4 = jax.random.split(key, 5)
        w_adj = jax.random.uniform(k1, (edge_type_num, u0, u1), jnp.float32, -k, k)
        b_adj = jax.random.uniform(k2, (edge_type_num, u1), jnp.float32, -k, k)
        w2 = jax.random.uniform(k3, (u0, u1), jnp.float32, -k, k)
        b2 = jax.random.uniform(k4, (1, u1), jnp.float32, -k, k)
        params.append((w_adj, b_adj, w2, b2))
    return params


def _reference_forward(params, n_tensor, adj_tensor, h_tensor=None):
    """Pure-JAX reference (mirrors the PyTorch module) for the correctness check."""
    hidden = h_tensor
    for (w_adj, b_adj, w2, b2) in params:
        ann = n_tensor if hidden is None else jnp.concatenate([n_tensor, hidden], -1)
        per_edge = jnp.einsum("bnd,edu->benu", ann, w_adj) + b_adj[None, :, None, :]
        out = jnp.einsum("benm,bemu->benu", adj_tensor, per_edge)
        out_sum = out.sum(axis=1)
        out_lin2 = jnp.einsum("bnd,du->bnu", ann, w2) + b2[None]
        hidden = jnp.tanh(out_sum + out_lin2)
    return hidden


if __name__ == "__main__":
    # Small shapes consistent with the module's forward:
    B, N = 2, 8                      # batch, nodes
    in_features = 4
    edge_type_num = 3
    graph_conv_units = [32, 16]

    key = jax.random.PRNGKey(0)
    kp, kn, ka = jax.random.split(key, 3)

    params = init_graph_convolution_params(kp, in_features, graph_conv_units,
                                           edge_type_num)

    n_tensor = jax.random.normal(kn, (B, N, in_features), jnp.float32)
    adj_logits = jax.random.normal(ka, (B, edge_type_num, N, N), jnp.float32)
    adj_tensor = jax.nn.softmax(adj_logits, axis=-1)   # row-normalized adjacency

    ref = _reference_forward(params, n_tensor, adj_tensor)

    # Exact-precision debug path (f32 matmuls) — verifies packing / padding math.
    fwd_f32 = jax.jit(functools.partial(multi_graph_conv_forward,
                                        compute_dtype=jnp.float32))
    out_f32 = jax.block_until_ready(fwd_f32(params, n_tensor, adj_tensor))
    assert out_f32.shape == (B, N, graph_conv_units[-1])
    assert jnp.allclose(out_f32, ref, atol=1e-4, rtol=1e-4), "f32 path mismatch"

    # Performance path: bf16 MXU operands, f32 accumulation.
    fwd = jax.jit(multi_graph_conv_forward)
    out = jax.block_until_ready(fwd(params, n_tensor, adj_tensor))
    assert out.shape == (B, N, graph_conv_units[-1])
    assert jnp.allclose(out, ref, atol=5e-2, rtol=5e-2), "bf16 path mismatch"

    print("KERNEL_OK")
</pallas_src>

<mosaic_0001>
module attributes {stable_mosaic.version = 11 : i64} {
  func.func @kernel(%arg0: i32, %arg1: memref<1x8x4xf32, #tpu.memory_space<vmem>>, %arg2: memref<1x3x8x8xf32, #tpu.memory_space<vmem>>, %arg3: memref<4x512xf32, #tpu.memory_space<vmem>>, %arg4: memref<1x512xf32, #tpu.memory_space<vmem>>, %arg5: memref<4x512xf32, #tpu.memory_space<vmem>>, %arg6: memref<128x512xf32, #tpu.memory_space<vmem>>, %arg7: memref<1x512xf32, #tpu.memory_space<vmem>>, %arg8: memref<1x8x128xf32, #tpu.memory_space<vmem>>) attributes {dimension_semantics = [#tpu.dimension_semantics<parallel>], iteration_bounds = array<i64: 2>, scalar_prefetch = 0 : i64, scratch_operands = 0 : i64, tpu.core_type = #tpu.core_type<tc>, window_params = [{transform_indices = @transform_0, window_bounds = array<i64: 1, 8, 4>}, {transform_indices = @transform_1, window_bounds = array<i64: 1, 3, 8, 8>}, {pipeline_mode = #tpu.pipeline_mode<synchronous>, transform_indices = @transform_2, window_bounds = array<i64: 4, 512>}, {pipeline_mode = #tpu.pipeline_mode<synchronous>, transform_indices = @transform_3, window_bounds = array<i64: 1, 512>}, {pipeline_mode = #tpu.pipeline_mode<synchronous>, transform_indices = @transform_4, window_bounds = array<i64: 4, 512>}, {pipeline_mode = #tpu.pipeline_mode<synchronous>, transform_indices = @transform_5, window_bounds = array<i64: 128, 512>}, {pipeline_mode = #tpu.pipeline_mode<synchronous>, transform_indices = @transform_6, window_bounds = array<i64: 1, 512>}, {transform_indices = @transform_7, window_bounds = array<i64: 1, 8, 128>}]} {
    %c0 = arith.constant 0 : index
    %c0_0 = arith.constant 0 : index
    %c0_1 = arith.constant 0 : index
    %0 = vector.load %arg1[%c0, %c0_0, %c0_1] : memref<1x8x4xf32, #tpu.memory_space<vmem>>, vector<1x8x4xf32>
    %1 = vector.shape_cast %0 : vector<1x8x4xf32> to vector<8x4xf32>
    %c0_2 = arith.constant 0 : index
    %c0_3 = arith.constant 0 : index
    %c0_4 = arith.constant 0 : index
    %c0_5 = arith.constant 0 : index
    %2 = vector.load %arg2[%c0_2, %c0_3, %c0_4, %c0_5] : memref<1x3x8x8xf32, #tpu.memory_space<vmem>>, vector<1x3x8x8xf32>
    %c0_6 = arith.constant 0 : index
    %c0_7 = arith.constant 0 : index
    %3 = vector.load %arg3[%c0_6, %c0_7] : memref<4x512xf32, #tpu.memory_space<vmem>>, vector<4x512xf32>
    %c0_8 = arith.constant 0 : index
    %c0_9 = arith.constant 0 : index
    %4 = vector.load %arg4[%c0_8, %c0_9] : memref<1x512xf32, #tpu.memory_space<vmem>>, vector<1x512xf32>
    %cst = arith.constant dense<0.000000e+00> : vector<8x512xf32>
    %5 = tpu.matmul %1, %3, %cst {dimension_numbers = #tpu.dot_dimension_numbers<[1], [0], [0], [1], [0, 0, 1, 1], [], []>} : vector<8x4xf32>, vector<4x512xf32>, vector<8x512xf32> -> vector<8x512xf32>
    %6 = vector.broadcast %4 : vector<1x512xf32> to vector<8x512xf32>
    %7 = arith.addf %5, %6 : vector<8x512xf32>
    %8 = vector.shape_cast %7 : vector<8x512xf32> to vector<1x8x512xf32>
    %9 = vector.extract_strided_slice %8 {offsets = [0, 0, 384], sizes = [1, 8, 128], strides = [1, 1, 1]} : vector<1x8x512xf32> to vector<1x8x128xf32>
    %10 = vector.extract_strided_slice %8 {offsets = [0, 0, 0], sizes = [1, 8, 384], strides = [1, 1, 1]} : vector<1x8x512xf32> to vector<1x8x384xf32>
    %11 = vector.extract_strided_slice %2 {offsets = [0, 0, 0, 0], sizes = [1, 1, 8, 8], strides = [1, 1, 1, 1]} : vector<1x3x8x8xf32> to vector<1x1x8x8xf32>
    %12 = vector.shape_cast %11 : vector<1x1x8x8xf32> to vector<1x8x8xf32>
    %13 = vector.extract_strided_slice %10 {offsets = [0, 0, 0], sizes = [1, 8, 128], strides = [1, 1, 1]} : vector<1x8x384xf32> to vector<1x8x128xf32>
    "tpu.trace_start"() <{level = 10 : i32, message = "bnm,bmu->bnu"}> : () -> ()
    %cst_10 = arith.constant dense<0.000000e+00> : vector<1x8x128xf32>
    %14 = tpu.matmul %12, %13, %cst_10 {dimension_numbers = #tpu.dot_dimension_numbers<[2], [1], [1], [2], [0, 0, 0, 1, 1, 2], [0], [0]>} : vector<1x8x8xf32>, vector<1x8x128xf32>, vector<1x8x128xf32> -> vector<1x8x128xf32>
    "tpu.trace_stop"() : () -> ()
    %15 = arith.addf %9, %14 : vector<1x8x128xf32>
    %16 = vector.extract_strided_slice %2 {offsets = [0, 1, 0, 0], sizes = [1, 1, 8, 8], strides = [1, 1, 1, 1]} : vector<1x3x8x8xf32> to vector<1x1x8x8xf32>
    %17 = vector.shape_cast %16 : vector<1x1x8x8xf32> to vector<1x8x8xf32>
    %18 = vector.extract_strided_slice %10 {offsets = [0, 0, 128], sizes = [1, 8, 128], strides = [1, 1, 1]} : vector<1x8x384xf32> to vector<1x8x128xf32>
    "tpu.trace_start"() <{level = 10 : i32, message = "bnm,bmu->bnu"}> : () -> ()
    %cst_11 = arith.constant dense<0.000000e+00> : vector<1x8x128xf32>
    %19 = tpu.matmul %17, %18, %cst_11 {dimension_numbers = #tpu.dot_dimension_numbers<[2], [1], [1], [2], [0, 0, 0, 1, 1, 2], [0], [0]>} : vector<1x8x8xf32>, vector<1x8x128xf32>, vector<1x8x128xf32> -> vector<1x8x128xf32>
    "tpu.trace_stop"() : () -> ()
    %20 = arith.addf %15, %19 : vector<1x8x128xf32>
    %21 = vector.extract_strided_slice %2 {offsets = [0, 2, 0, 0], sizes = [1, 1, 8, 8], strides = [1, 1, 1, 1]} : vector<1x3x8x8xf32> to vector<1x1x8x8xf32>
    %22 = vector.shape_cast %21 : vector<1x1x8x8xf32> to vector<1x8x8xf32>
    %23 = vector.extract_strided_slice %10 {offsets = [0, 0, 256], sizes = [1, 8, 128], strides = [1, 1, 1]} : vector<1x8x384xf32> to vector<1x8x128xf32>
    "tpu.trace_start"() <{level = 10 : i32, message = "bnm,bmu->bnu"}> : () -> ()
    %cst_12 = arith.constant dense<0.000000e+00> : vector<1x8x128xf32>
    %24 = tpu.matmul %22, %23, %cst_12 {dimension_numbers = #tpu.dot_dimension_numbers<[2], [1], [1], [2], [0, 0, 0, 1, 1, 2], [0], [0]>} : vector<1x8x8xf32>, vector<1x8x128xf32>, vector<1x8x128xf32> -> vector<1x8x128xf32>
    "tpu.trace_stop"() : () -> ()
    %25 = arith.addf %20, %24 : vector<1x8x128xf32>
    %26 = math.tanh %25 : vector<1x8x128xf32>
    %27 = vector.shape_cast %26 : vector<1x8x128xf32> to vector<8x128xf32>
    %c0_13 = arith.constant 0 : index
    %c0_14 = arith.constant 0 : index
    %28 = vector.load %arg5[%c0_13, %c0_14] : memref<4x512xf32, #tpu.memory_space<vmem>>, vector<4x512xf32>
    %c0_15 = arith.constant 0 : index
    %c0_16 = arith.constant 0 : index
    %29 = vector.load %arg6[%c0_15, %c0_16] : memref<128x512xf32, #tpu.memory_space<vmem>>, vector<128x512xf32>
    %c0_17 = arith.constant 0 : index
    %c0_18 = arith.constant 0 : index
    %30 = vector.load %arg7[%c0_17, %c0_18] : memref<1x512xf32, #tpu.memory_space<vmem>>, vector<1x512xf32>
    %cst_19 = arith.constant dense<0.000000e+00> : vector<8x512xf32>
    %31 = tpu.matmul %1, %28, %cst_19 {dimension_numbers = #tpu.dot_dimension_numbers<[1], [0], [0], [1], [0, 0, 1, 1], [], []>} : vector<8x4xf32>, vector<4x512xf32>, vector<8x512xf32> -> vector<8x512xf32>
    %cst_20 = arith.constant dense<0.000000e+00> : vector<8x512xf32>
    %32 = tpu.matmul %27, %29, %cst_20 {dimension_numbers = #tpu.dot_dimension_numbers<[1], [0], [0], [1], [0, 0, 1, 1], [], []>} : vector<8x128xf32>, vector<128x512xf32>, vector<8x512xf32> -> vector<8x512xf32>
    %33 = arith.addf %31, %32 : vector<8x512xf32>
    %34 = vector.broadcast %30 : vector<1x512xf32> to vector<8x512xf32>
    %35 = arith.addf %33, %34 : vector<8x512xf32>
    %36 = vector.shape_cast %35 : vector<8x512xf32> to vector<1x8x512xf32>
    %37 = vector.extract_strided_slice %36 {offsets = [0, 0, 384], sizes = [1, 8, 128], strides = [1, 1, 1]} : vector<1x8x512xf32> to vector<1x8x128xf32>
    %38 = vector.extract_strided_slice %36 {offsets = [0, 0, 0], sizes = [1, 8, 384], strides = [1, 1, 1]} : vector<1x8x512xf32> to vector<1x8x384xf32>
    %39 = vector.extract_strided_slice %2 {offsets = [0, 0, 0, 0], sizes = [1, 1, 8, 8], strides = [1, 1, 1, 1]} : vector<1x3x8x8xf32> to vector<1x1x8x8xf32>
    %40 = vector.shape_cast %39 : vector<1x1x8x8xf32> to vector<1x8x8xf32>
    %41 = vector.extract_strided_slice %38 {offsets = [0, 0, 0], sizes = [1, 8, 128], strides = [1, 1, 1]} : vector<1x8x384xf32> to vector<1x8x128xf32>
    "tpu.trace_start"() <{level = 10 : i32, message = "bnm,bmu->bnu"}> : () -> ()
    %cst_21 = arith.constant dense<0.000000e+00> : vector<1x8x128xf32>
    %42 = tpu.matmul %40, %41, %cst_21 {dimension_numbers = #tpu.dot_dimension_numbers<[2], [1], [1], [2], [0, 0, 0, 1, 1, 2], [0], [0]>} : vector<1x8x8xf32>, vector<1x8x128xf32>, vector<1x8x128xf32> -> vector<1x8x128xf32>
    "tpu.trace_stop"() : () -> ()
    %43 = arith.addf %37, %42 : vector<1x8x128xf32>
    %44 = vector.extract_strided_slice %2 {offsets = [0, 1, 0, 0], sizes = [1, 1, 8, 8], strides = [1, 1, 1, 1]} : vector<1x3x8x8xf32> to vector<1x1x8x8xf32>
    %45 = vector.shape_cast %44 : vector<1x1x8x8xf32> to vector<1x8x8xf32>
    %46 = vector.extract_strided_slice %38 {offsets = [0, 0, 128], sizes = [1, 8, 128], strides = [1, 1, 1]} : vector<1x8x384xf32> to vector<1x8x128xf32>
    "tpu.trace_start"() <{level = 10 : i32, message = "bnm,bmu->bnu"}> : () -> ()
    %cst_22 = arith.constant dense<0.000000e+00> : vector<1x8x128xf32>
    %47 = tpu.matmul %45, %46, %cst_22 {dimension_numbers = #tpu.dot_dimension_numbers<[2], [1], [1], [2], [0, 0, 0, 1, 1, 2], [0], [0]>} : vector<1x8x8xf32>, vector<1x8x128xf32>, vector<1x8x128xf32> -> vector<1x8x128xf32>
    "tpu.trace_stop"() : () -> ()
    %48 = arith.addf %43, %47 : vector<1x8x128xf32>
    %49 = vector.extract_strided_slice %2 {offsets = [0, 2, 0, 0], sizes = [1, 1, 8, 8], strides = [1, 1, 1, 1]} : vector<1x3x8x8xf32> to vector<1x1x8x8xf32>
    %50 = vector.shape_cast %49 : vector<1x1x8x8xf32> to vector<1x8x8xf32>
    %51 = vector.extract_strided_slice %38 {offsets = [0, 0, 256], sizes = [1, 8, 128], strides = [1, 1, 1]} : vector<1x8x384xf32> to vector<1x8x128xf32>
    "tpu.trace_start"() <{level = 10 : i32, message = "bnm,bmu->bnu"}> : () -> ()
    %cst_23 = arith.constant dense<0.000000e+00> : vector<1x8x128xf32>
    %52 = tpu.matmul %50, %51, %cst_23 {dimension_numbers = #tpu.dot_dimension_numbers<[2], [1], [1], [2], [0, 0, 0, 1, 1, 2], [0], [0]>} : vector<1x8x8xf32>, vector<1x8x128xf32>, vector<1x8x128xf32> -> vector<1x8x128xf32>
    "tpu.trace_stop"() : () -> ()
    %53 = arith.addf %48, %52 : vector<1x8x128xf32>
    %54 = math.tanh %53 : vector<1x8x128xf32>
    %c0_24 = arith.constant 0 : index
    %c0_25 = arith.constant 0 : index
    %c0_26 = arith.constant 0 : index
    %55 = vector.load %arg8[%c0_24, %c0_25, %c0_26] : memref<1x8x128xf32, #tpu.memory_space<vmem>>, vector<1x8x128xf32>
    tpu.vector_store %arg8[%c0_24, %c0_25, %c0_26], %54 {strides = array<i32>} : memref<1x8x128xf32, #tpu.memory_space<vmem>>, vector<1x8x128xf32>,
    return
  }
  func.func @transform_0(%arg0: i32) -> (i32, i32, i32) {
    %c0_i32 = arith.constant 0 : i32
    %c0_i32_0 = arith.constant 0 : i32
    %c0_i32_1 = arith.constant 0 : i32
    return %arg0, %c0_i32, %c0_i32_0 : i32, i32, i32
  }
  func.func @transform_1(%arg0: i32) -> (i32, i32, i32, i32) {
    %c0_i32 = arith.constant 0 : i32
    %c0_i32_0 = arith.constant 0 : i32
    %c0_i32_1 = arith.constant 0 : i32
    %c0_i32_2 = arith.constant 0 : i32
    return %arg0, %c0_i32, %c0_i32_0, %c0_i32_1 : i32, i32, i32, i32
  }
  func.func @transform_2(%arg0: i32) -> (i32, i32) {
    %c0_i32 = arith.constant 0 : i32
    %c0_i32_0 = arith.constant 0 : i32
    %c0_i32_1 = arith.constant 0 : i32
    return %c0_i32, %c0_i32_0 : i32, i32
  }
  func.func @transform_3(%arg0: i32) -> (i32, i32) {
    %c0_i32 = arith.constant 0 : i32
    %c0_i32_0 = arith.constant 0 : i32
    %c0_i32_1 = arith.constant 0 : i32
    return %c0_i32, %c0_i32_0 : i32, i32
  }
  func.func @transform_4(%arg0: i32) -> (i32, i32) {
    %c0_i32 = arith.constant 0 : i32
    %c0_i32_0 = arith.constant 0 : i32
    %c0_i32_1 = arith.constant 0 : i32
    return %c0_i32, %c0_i32_0 : i32, i32
  }
  func.func @transform_5(%arg0: i32) -> (i32, i32) {
    %c0_i32 = arith.constant 0 : i32
    %c0_i32_0 = arith.constant 0 : i32
    %c0_i32_1 = arith.constant 0 : i32
    return %c0_i32, %c0_i32_0 : i32, i32
  }
  func.func @transform_6(%arg0: i32) -> (i32, i32) {
    %c0_i32 = arith.constant 0 : i32
    %c0_i32_0 = arith.constant 0 : i32
    %c0_i32_1 = arith.constant 0 : i32
    return %c0_i32, %c0_i32_0 : i32, i32
  }
  func.func @transform_7(%arg0: i32) -> (i32, i32, i32) {
    %c0_i32 = arith.constant 0 : i32
    %c0_i32_0 = arith.constant 0 : i32
    %c0_i32_1 = arith.constant 0 : i32
    return %arg0, %c0_i32, %c0_i32_0 : i32, i32, i32
  }
}

</mosaic_0001>

<bundles_post_ra>
// kernel: multi_graph_conv_forward.1
= control target key start
LH: loop header
LB: loop body
LE: loop exit
PB: predicated region body
PF: predicated region fallthrough
CT: control target
= control target key end

     0   :  { %12 = vsyncpa [#allocation3], 0  ;;  %s1428_s0 = inlined_call_operand.vmem [shape: f32[2,8,4], index: 0, kind: input, shape index: {}]   ;;  %s1429_s1 = inlined_call_operand.vmem [shape: f32[2,3,8,8], index: 1, kind: input, shape index: {}]   ;;  %s1430_s2 = inlined_call_operand.vmem [shape: f32[4,512], index: 2, kind: input, shape index: {}]   ;;  %s1431_s3 = inlined_call_operand.vmem [shape: f32[1,512], index: 3, kind: input, shape index: {}]   ;;  %s1432_s4 = inlined_call_operand.vmem [shape: f32[4,512], index: 4, kind: input, shape index: {}]   ;;  %s1433_s5 = inlined_call_operand.vmem [shape: f32[128,512], index: 5, kind: input, shape index: {}]   ;;  %s1434_s6 = inlined_call_operand.vmem [shape: f32[1,512], index: 6, kind: input, shape index: {}]   ;;  %s1435_s7 = inlined_call_operand.hbm [shape: f32[2,8,128], index: 7, kind: output, shape index: {}]  }
   0x1   :  { %14 = vsyncpa [#allocation3 + $0x1], 0  ;;  %s1076_s24 = smov 0   ;;  %s1078_s25 = smov 0  }
   0x2   :  { %s1080_s26 = smov 0   ;;  %s1082_s27 = smov 0  }
   0x3 LB: > { %s1097_s28 = sadd.s32 4294967295, %s1034_s27   ;;  %s895_s29 = sadd.s32 4294967294, %s1034_s27   ;;  %s1034_s27 = sphi %s1082_s27, %s1441_s27   ;;  %s1030_s26 = sphi %s1080_s26, %s1440_s26   ;;  %s1026_s25 = sphi %s1078_s25, %s1439_s25   ;;  %s1022_s24 = sphi %s1076_s24, %s1438_s24  }
   0x4   : > { %s1101_s30 = sadd.s32 1, %s1034_s27   ;;  %s184_s8 = sadd.s32 1, %s1030_s26 }
   0x5   : > { %s181_s9 = ssub.s32 %s1034_s27, %s1101_s30  ;;  %p194_p0 = scmp.ne.s32.totalorder %s1030_s26, %s1026_s25 }
   0x6   : > { %p182_p1 = scmp.eq.s32.totalorder %s181_s9, 0  ;;  %p195_p2 = scmp.eq.s32.totalorder %s1097_s28, 1 }
   0x7   : > { %p200_p3 = scmp.ne.s32.totalorder %s1026_s25, %s1022_s24  ;;  %p201_p4 = scmp.eq.s32.totalorder %s895_s29, 1 }
   0x8   : > { %s1112_s10 = scalar_select %p182_p1, %s1030_s26, %s184_s8  }
   0x9   : > { %p1114_p5 = por %p195_p2, %p194_p0  ;;  %p1118_p6 = por %p201_p4, %p200_p3 }
   0xa   : > { %p898_p7 = scmp.ge.s32.totalorder %s1034_s27, 1  ;;  %p249_p8 = scmp.lt.s32.totalorder %s1034_s27, 3 }
   0xc   : > { %p250_p9 = pnand %p898_p7, %p249_p8 }
   0xd   : > { %p285_p10 = scmp.lt.s32.totalorder (!%p250_p9), %s1097_s28, 1  ;;  %s992_s29 = scalar_lea.hbm (!%p250_p9), %s1435_s7, 16 }
   0xe   : > { %253 = sbr.rel (%p250_p9) target bundleno = 598 (0x256), region = 48 }
  0x13   : > { %v299_v0 = vld [vmem:[%s1430_s2 + $0x8] sm:$0xff]  ;;  %v298_v1 = vld [vmem:[%s1430_s2] sm:$0xff]  ;;  %s1132_s17 = scalar_select %p285_p10, %s1097_s28, 1  ;;  %vm323_vm0 = vcmask 1043456   ;;  %vm319_vm1 = vcmask 31744   ;;  %vm412_vm2 = vcmask 64512  }
  0x14   : > { %314 = vst [vmem:[#allocation1 + $0x10] ss:$2 sm:$0xff] %v299_v0  ;;  %v486_v3 = vld [vmem:[%s1432_s4] sm:$0xff]  ;;  %v487_v4 = vld [vmem:[%s1432_s4 + $0x8] sm:$0xff]  ;;  %v550_v29 = vld [vmem:[%s1433_s5 + $0x1f0] sm:$0xff] }
  0x15   : > { %312 = vst [vmem:[#allocation1] ss:$2 sm:$0xff] %v298_v1  ;;  %s900_s18 = sshll.u32 %s1132_s17, 3  ;;  %v548_v9 = vld [vmem:[%s1433_s5 + $0x1e0] sm:$0xff]  ;;  %s928_s20 = smul.u32 24, %s1132_s17  ;;  %v549_v28 = vld [vmem:[%s1433_s5 + $0x1e8] sm:$0xff] }
  0x16   : > { %s288_s21 = scalar_lea.vmem %s1428_s0, %s900_s18  ;;  %v544_v10 = vld [vmem:[%s1433_s5 + $0x1c0] sm:$0xff]  ;;  %v545_v30 = vld [vmem:[%s1433_s5 + $0x1c8] sm:$0xff]  ;;  %v546_v32 = vld [vmem:[%s1433_s5 + $0x1d0] sm:$0xff]  ;;  %s282_s17 = sand.u32 1, %s1026_s25  }
  0x17   : > { %v1138_v2 = vld [vmem:[%s288_s21] sm:$0xff]  ;;  %s293_s23 = scalar_lea.vmem %s1429_s1, %s928_s20  ;;  %v541_v35 = vld [vmem:[%s1433_s5 + $0x1a8] sm:$0xff]  ;;  %v551_v36 = vld [vmem:[%s1433_s5 + $0x1f8] sm:$0xff]  ;;  %s899_s8 = sshll.u32 %s282_s17, 3 }
  0x18   : > { %v540_v11 = vld [vmem:[%s1433_s5 + $0x1a0] sm:$0xff]  ;;  %v1199_v27 = vld [vmem:[%s293_s23 + $0x8] sm:$0xff]  ;;  %v1217_v34 = vld [vmem:[%s293_s23 + $0x10] sm:$0xff]  ;;  %s284_s15 = scalar_lea.vmem [#allocation2], %s899_s8  ;;  %s809_s19 = scalar_lea.sflag [#allocation3], %s282_s17 }
  0x19   : > { %v536_v12 = vld [vmem:[%s1433_s5 + $0x180] sm:$0xff]  ;;  %v542_v37 = vld [vmem:[%s1433_s5 + $0x1b0] sm:$0xff]  ;;  %v537_v38 = vld [vmem:[%s1433_s5 + $0x188] sm:$0xff]  ;;  %s821_s16 = sshll.u32 %s284_s15, 4  ;;  %s822_s16 = int_to_ptr.vmem [resolvable:$true] %s821_s16 }
  0x1a   : > { %v532_v13 = vld [vmem:[%s1433_s5 + $0x160] sm:$0xff]  ;;  %v547_v39 = vld [vmem:[%s1433_s5 + $0x1d8] sm:$0xff]  ;;  %v538_v40 = vld [vmem:[%s1433_s5 + $0x190] sm:$0xff] }
  0x1b   : > { %v317_v5 = vld.sshfl [vmem:[#allocation1 + $0x10] sm:$0xff pattern:$0x75316420]  ;;  %v318_v6 = vld.sshfl [vmem:[#allocation1 + $0x18] sm:$0xff pattern:$0x75316420] }
  0x1c   : > { %906 = vmatpush.msk.msra.mxu2 %vm323_vm0, %v317_v5  ;;  %v315_v7 = vld.sshfl [vmem:[#allocation1] sm:$0xff pattern:$0x75316420]  ;;  %v316_v8 = vld.sshfl [vmem:[#allocation1 + $0x8] sm:$0xff pattern:$0x75316420]  ;;  %908 = vmatpush.msk.msra.mxu3 %vm323_vm0, %v318_v6 }
  0x1d   : > { %907 = vmatmul.msk.f32.vlgmr.msra.gmra.mxu2 %vm319_vm1, %v1138_v2  ;;  %902 = vmatpush.msk.msra.mxu0 %vm323_vm0, %v315_v7  ;;  %635 = vst [vmem:[#allocation1] ss:$2 sm:$0xff] %v486_v3  ;;  %v528_v14 = vld [vmem:[%s1433_s5 + $0x140] sm:$0xff]  ;;  %v533_v41 = vld [vmem:[%s1433_s5 + $0x168] sm:$0xff]  ;;  %v543_v42 = vld [vmem:[%s1433_s5 + $0x1b8] sm:$0xff] }
  0x1e   : > { %903 = vmatmul.msk.f32.vlgmr.msra.gmra.mxu0 %vm319_vm1, %v1138_v2  ;;  %904 = vmatpush.msk.msra.mxu1 %vm323_vm0, %v316_v8  ;;  %637 = vst [vmem:[#allocation1 + $0x10] ss:$2 sm:$0xff] %v487_v4  ;;  %v524_v15 = vld [vmem:[%s1433_s5 + $0x120] sm:$0xff]  ;;  %v534_v43 = vld [vmem:[%s1433_s5 + $0x170] sm:$0xff]  ;;  %v529_v44 = vld [vmem:[%s1433_s5 + $0x148] sm:$0xff] }
  0x1f   : > { %905 = vmatmul.msk.f32.vlgmr.msra.gmra.mxu1 %vm319_vm1, %v1138_v2  ;;  %909 = vmatmul.msk.f32.vlgmr.msra.gmra.mxu3 %vm319_vm1, %v1138_v2  ;;  %v520_v16 = vld [vmem:[%s1433_s5 + $0x100] sm:$0xff]  ;;  %v539_v45 = vld [vmem:[%s1433_s5 + $0x198] sm:$0xff]  ;;  %v530_v46 = vld [vmem:[%s1433_s5 + $0x150] sm:$0xff] }
  0x20   : > { %553 = vmatpush.msrb.mxu3 %v548_v9  ;;  %v516_v17 = vld [vmem:[%s1433_s5 + $0xe0] sm:$0xff]  ;;  %v525_v47 = vld [vmem:[%s1433_s5 + $0x128] sm:$0xff]  ;;  %v535_v48 = vld [vmem:[%s1433_s5 + $0x178] sm:$0xff] }
  0x21   : > { %v1188_v18 = vld [vmem:[%s1431_s3] sm:$0xf]  ;;  %v526_v49 = vld [vmem:[%s1433_s5 + $0x130] sm:$0xff]  ;;  %v521_v50 = vld [vmem:[%s1433_s5 + $0x108] sm:$0xff] }
  0x22   : > { %554 = vmatpush.msrb.mxu3 %v544_v10  ;;  %v302_v19 = vperm.slane %v1188_v18, 0  ;;  %v303_v20 = vperm.slane %v1188_v18, 1  ;;  %v1196_v24 = vld [vmem:[%s293_s23] sm:$0xff]  ;;  %v304_v25 = vperm.slane %v1188_v18, 2  ;;  %v531_v51 = vld [vmem:[%s1433_s5 + $0x158] sm:$0xff]  ;;  %v522_v52 = vld [vmem:[%s1433_s5 + $0x110] sm:$0xff] }
  0x23   : > { %v517_v53 = vld [vmem:[%s1433_s5 + $0xe8] sm:$0xff]  ;;  %v527_v54 = vld [vmem:[%s1433_s5 + $0x138] sm:$0xff]  ;;  %v518_v55 = vld [vmem:[%s1433_s5 + $0xf0] sm:$0xff]  ;;  %s925_s23 = sshll.u32 %s1097_s28, 3 }
  0x24   : > { %555 = vmatpush.msrb.mxu3 %v540_v11  ;;  %v523_v56 = vld [vmem:[%s1433_s5 + $0x118] sm:$0xff]  ;;  %v512_v58 = vld [vmem:[%s1433_s5 + $0xc0] sm:$0xff]  ;;  %v513_v59 = vld [vmem:[%s1433_s5 + $0xc8] sm:$0xff]  ;;  %s819_s14 = scalar_lea.hbm %s1435_s7, %s925_s23 }
  0x25   : > { %v519_v57 = vld [vmem:[%s1433_s5 + $0xf8] sm:$0xff]  ;;  %v514_v60 = vld [vmem:[%s1433_s5 + $0xd0] sm:$0xff]  ;;  %v508_v62 = vld [vmem:[%s1433_s5 + $0xa0] sm:$0xff]  ;;  %s823_s18 = sshll.u32 %s819_s14, 4  ;;  %s824_s18 = int_to_ptr.hbm [resolvable:$true] %s823_s18 }
  0x26   : > { %556 = vmatpush.msrb.mxu3 %v536_v12  ;;  %v515_v61 = vld [vmem:[%s1433_s5 + $0xd8] sm:$0xff]  ;;  %v509_v63 = vld [vmem:[%s1433_s5 + $0xa8] sm:$0xff]  ;;  %v510_v0 = vld [vmem:[%s1433_s5 + $0xb0] sm:$0xff]  ;;  %s986_s20 = sshra.s32 %s824_s18, 4  ;;  %s987_s20 = int_to_ptr.hbm [resolvable:$true] %s986_s20 }
  0x27   : > { %v511_v1 = vld [vmem:[%s1433_s5 + $0xb8] sm:$0xff]  ;;  %v504_v3 = vld [vmem:[%s1433_s5 + $0x80] sm:$0xff]  ;;  %v505_v4 = vld [vmem:[%s1433_s5 + $0x88] sm:$0xff]  ;;  %s988_s21 = scalar_lea.hbm %s987_s20, 8  ;;  %p993_p0 = scmp.lt.s32.totalorder %s987_s20, %s1435_s7 }
  0x28   : > { %557 = vmatpush.msrb.mxu3 %v532_v13  ;;  %v506_v5 = vld [vmem:[%s1433_s5 + $0x90] sm:$0xff]  ;;  %v507_v6 = vld [vmem:[%s1433_s5 + $0x98] sm:$0xff]  ;;  %v500_v7 = vld [vmem:[%s1433_s5 + $0x60] sm:$0xff]  ;;  %p989_p11 = scmp.ne.s32.totalorder %s987_s20, %s988_s21  ;;  %p994_p1 = scmp.lt.s32.totalorder %s992_s29, %s988_s21 }
  0x29   : > { %v501_v8 = vld [vmem:[%s1433_s5 + $0x68] sm:$0xff]  ;;  %v502_v9 = vld [vmem:[%s1433_s5 + $0x70] sm:$0xff]  ;;  %v503_v10 = vld [vmem:[%s1433_s5 + $0x78] sm:$0xff] }
  0x2a   : > { %558 = vmatpush.msrb.mxu3 %v528_v14  ;;  %v496_v11 = vld [vmem:[%s1433_s5 + $0x40] sm:$0xff]  ;;  %v497_v12 = vld [vmem:[%s1433_s5 + $0x48] sm:$0xff]  ;;  %v498_v13 = vld [vmem:[%s1433_s5 + $0x50] sm:$0xff]  ;;  %p990_p12 = pnand %p989_p11, %p1114_p5  ;;  %p995_p2 = por %p994_p1, %p993_p0 }
  0x2b   : > { %v499_v14 = vld [vmem:[%s1433_s5 + $0x58] sm:$0xff] }
  0x2c   : > { %559 = vmatpush.msrb.mxu3 %v524_v15  ;;  %v492_v15 = vld [vmem:[%s1433_s5 + $0x20] sm:$0xff]  ;;  %p991_p13 = pneg %p990_p12 }
  0x2e   : > { %560 = vmatpush.msrb.mxu3 %v520_v16  ;;  %v493_v16 = vld [vmem:[%s1433_s5 + $0x28] sm:$0xff]  ;;  %p996_p3 = pnand %p995_p2, %p991_p13 }
  0x30   : > { %561 = vmatpush.msrb.mxu3 %v516_v17  ;;  %v494_v17 = vld [vmem:[%s1433_s5 + $0x30] sm:$0xff] }
  0x32   : > { %562 = vmatpush.msrb.mxu3 %v512_v58 }
  0x34   : > { %563 = vmatpush.msrb.mxu3 %v508_v62 }
  0x36   : > { %564 = vmatpush.msrb.mxu3 %v504_v3 }
  0x38   : > { %565 = vmatpush.msrb.mxu3 %v500_v7 }
  0x3a   : > { %566 = vmatpush.msrb.mxu3 %v496_v11 }
  0x3c   : > { %567 = vmatpush.msrb.mxu3 %v492_v15 }
  0x9b   : > { %v349_v21 = vpop.f32.mrf.mxu0 }
  0x9c   : > { %v350_v22 = vadd.f32 %v349_v21, %v302_v19  ;;  %v369_v23 = vpop.f32.mrf.mxu1  ;;  %v495_v19 = vld [vmem:[%s1433_s5 + $0x38] sm:$0xff]  ;;  %v489_v21 = vld [vmem:[%s1433_s5 + $0x8] sm:$0xff] }
  0x9d   : > { %v370_v26 = vadd.f32 %v369_v23, %v303_v20  ;;  %v488_v20 = vld [vmem:[%s1433_s5] sm:$0xff]  ;;  %v491_v23 = vld [vmem:[%s1433_s5 + $0x18] sm:$0xff] }
  0x9e   : > { %431 = vmatpush.msrb.mxu0 %v350_v22  ;;  %v490_v22 = vld [vmem:[%s1433_s5 + $0x10] sm:$0xff]  ;;  %568 = vmatpush.msrb.mxu3 %v488_v20 }
  0x9f   : > { %910 = vmatmul.msk.f32.vlgmr.msrb.gmra.mxu0 %vm412_vm2, %v1196_v24  ;;  %455 = vmatpush.msrb.mxu1 %v370_v26  ;;  %v639_v26 = vld.sshfl [vmem:[#allocation1 + $0x8] sm:$0xff pattern:$0x75316420] }
  0xa0   : > { %v389_v31 = vpop.f32.mrf.mxu2  ;;  %911 = vmatmul.msk.f32.vlgmr.msrb.gmra.mxu1 %vm412_vm2, %v1199_v27  ;;  %573 = vmatpush.msra.mxu0 %v549_v28  ;;  %v640_v28 = vld.sshfl [vmem:[#allocation1 + $0x10] sm:$0xff pattern:$0x75316420] }
  0xa1   : > { %v390_v33 = vadd.f32 %v389_v31, %v304_v25  ;;  %593 = vmatpush.msra.mxu1 %v550_v29  ;;  %v638_v25 = vld.sshfl [vmem:[#allocation1] sm:$0xff pattern:$0x75316420]  ;;  %v641_v29 = vld.sshfl [vmem:[#allocation1 + $0x18] sm:$0xff pattern:$0x75316420] }
  0xa2   : > { %574 = vmatpush.msra.mxu0 %v545_v30  ;;  %913 = vmatpush.msk.msra.mxu3 %vm323_vm0, %v638_v25  ;;  %v305_v30 = vperm.slane %v1188_v18, 3  ;;  %v409_v31 = vpop.f32.mrf.mxu3 }
  0xa3   : > { %479 = vmatpush.msrb.mxu2 %v390_v33  ;;  %594 = vmatpush.msra.mxu1 %v546_v32 }
  0xa4   : > { %912 = vmatmul.msk.f32.vlgmr.msrb.gmra.mxu2 %vm412_vm2, %v1217_v34  ;;  %575 = vmatpush.msra.mxu0 %v541_v35  ;;  %v410_v32 = vadd.f32 %v409_v31, %v305_v30 }
  0xa5   : > { %613 = vmatpush.msra.mxu2 %v551_v36  ;;  %595 = vmatpush.msra.mxu1 %v542_v37 }
  0xa6   : > { %576 = vmatpush.msra.mxu0 %v537_v38 }
  0xa7   : > { %614 = vmatpush.msra.mxu2 %v547_v39  ;;  %596 = vmatpush.msra.mxu1 %v538_v40 }
  0xa8   : > { %577 = vmatpush.msra.mxu0 %v533_v41 }
  0xa9   : > { %615 = vmatpush.msra.mxu2 %v543_v42  ;;  %597 = vmatpush.msra.mxu1 %v534_v43  ;;  %v552_v42 = vld [vmem:[%s1434_s6] sm:$0xf] }
  0xaa   : > { %578 = vmatpush.msra.mxu0 %v529_v44  ;;  %v732_v44 = vperm.slane %v552_v42, 1  ;;  %v734_v58 = vperm.slane %v552_v42, 3 }
  0xab   : > { %616 = vmatpush.msra.mxu2 %v539_v45  ;;  %598 = vmatpush.msra.mxu1 %v530_v46  ;;  %v733_v46 = vperm.slane %v552_v42, 2 }
  0xac   : > { %579 = vmatpush.msra.mxu0 %v525_v47 }
  0xad   : > { %617 = vmatpush.msra.mxu2 %v535_v48  ;;  %599 = vmatpush.msra.mxu1 %v526_v49 }
  0xae   : > { %580 = vmatpush.msra.mxu0 %v521_v50 }
  0xaf   : > { %618 = vmatpush.msra.mxu2 %v531_v51  ;;  %600 = vmatpush.msra.mxu1 %v522_v52  ;;  %v731_v52 = vperm.slane %v552_v42, 0 }
  0xb0   : > { %581 = vmatpush.msra.mxu0 %v517_v53 }
  0xb1   : > { %619 = vmatpush.msra.mxu2 %v527_v54  ;;  %601 = vmatpush.msra.mxu1 %v518_v55 }
  0xb2   : > { %582 = vmatpush.msra.mxu0 %v513_v59 }
  0xb3   : > { %620 = vmatpush.msra.mxu2 %v523_v56  ;;  %602 = vmatpush.msra.mxu1 %v514_v60 }
  0xb4   : > { %583 = vmatpush.msra.mxu0 %v509_v63 }
  0xb5   : > { %621 = vmatpush.msra.mxu2 %v519_v57  ;;  %603 = vmatpush.msra.mxu1 %v510_v0 }
  0xb6   : > { %584 = vmatpush.msra.mxu0 %v505_v4 }
  0xb7   : > { %622 = vmatpush.msra.mxu2 %v515_v61  ;;  %604 = vmatpush.msra.mxu1 %v506_v5 }
  0xb8   : > { %585 = vmatpush.msra.mxu0 %v501_v8 }
  0xb9   : > { %623 = vmatpush.msra.mxu2 %v511_v1  ;;  %605 = vmatpush.msra.mxu1 %v502_v9 }
  0xba   : > { %586 = vmatpush.msra.mxu0 %v497_v12 }
  0xbb   : > { %624 = vmatpush.msra.mxu2 %v507_v6  ;;  %606 = vmatpush.msra.mxu1 %v498_v13 }
  0xbc   : > { %587 = vmatpush.msra.mxu0 %v493_v16 }
  0xbd   : > { %625 = vmatpush.msra.mxu2 %v503_v10  ;;  %607 = vmatpush.msra.mxu1 %v494_v17 }
  0xbe   : > { %588 = vmatpush.msra.mxu0 %v489_v21 }
  0xbf   : > { %626 = vmatpush.msra.mxu2 %v499_v14  ;;  %608 = vmatpush.msra.mxu1 %v490_v22 }
  0xc0   : > { %915 = vmatpush.msk.msrb.mxu0 %vm323_vm0, %v639_v26 }
  0xc1   : > { %627 = vmatpush.msra.mxu2 %v495_v19  ;;  %917 = vmatpush.msk.msrb.mxu1 %vm323_vm0, %v640_v28 }
  0xc3   : > { %628 = vmatpush.msra.mxu2 %v491_v23 }
  0xc5   : > { %919 = vmatpush.msk.msrb.mxu2 %vm323_vm0, %v641_v29 }
 0x11c   : > { %v433_v33 = vpop.f32.mrf.mxu0 }
 0x11d   : > { %v436_v35 = vadd.f32 %v433_v33, %v410_v32  ;;  %v457_v36 = vpop.f32.mrf.mxu1 }
 0x11f   : > { %v460_v37 = vadd.f32 %v457_v36, %v436_v35 }
 0x127   : > { %v481_v38 = vpop.f32.mrf.mxu2 }
 0x128   : > { %v484_v39 = vadd.f32 %v481_v38, %v460_v37 }
 0x12a   : > { %968 = vtanh.f32 %v484_v39 }
 0x130   : > { %v969_v40 = vpop.eup %968 }
 0x131   : > { %569 = vmatmul.f32.vlgmr.msrb.gmra.mxu3 %v969_v40  ;;  %589 = vmatmul.f32.vlgmr.msra.gmra.mxu0 %v969_v40 }
 0x132   : > { %609 = vmatmul.f32.vlgmr.msra.gmra.mxu1 %v969_v40  ;;  %629 = vmatmul.f32.vlgmr.msra.gmra.mxu2 %v969_v40 }
 0x139   : > { %914 = vmatmul.msk.f32.vlgmr.msra.gmra.mxu3 %vm319_vm1, %v1138_v2  ;;  %916 = vmatmul.msk.f32.vlgmr.msrb.gmra.mxu0 %vm319_vm1, %v1138_v2 }
 0x13a   : > { %918 = vmatmul.msk.f32.vlgmr.msrb.gmra.mxu1 %vm319_vm1, %v1138_v2  ;;  %920 = vmatmul.msk.f32.vlgmr.msrb.gmra.mxu2 %vm319_vm1, %v1138_v2 }
 0x1ae   : > { %v590_v18 = vpop.f32.mrf.mxu0 }
 0x1af   : > { %v610_v41 = vpop.f32.mrf.mxu1 }
 0x1b4   : > { %v570_v43 = vpop.f32.mrf.mxu3 }
 0x1b5   : > { %v630_v55 = vpop.f32.mrf.mxu2 }
 0x1b6   : > { %v687_v45 = vpop.f32.mrf.mxu0 }
 0x1b7   : > { %v688_v47 = vadd.f32 %v687_v45, %v590_v18  ;;  %v707_v48 = vpop.f32.mrf.mxu1 }
 0x1b8   : > { %v708_v49 = vadd.f32 %v707_v48, %v610_v41 }
 0x1b9   : > { %v740_v50 = vadd.f32 %v732_v44, %v688_v47 }
 0x1ba   : > { %v741_v51 = vadd.f32 %v733_v46, %v708_v49 }
 0x1bb   : > { %779 = vmatpush.msra.mxu0 %v740_v50 }
 0x1bc   : > { %800 = vmatpush.msra.mxu1 %v741_v51  ;;  %v667_v2 = vpop.f32.mrf.mxu3  ;;  %922 = vmatmul.msk.f32.vlgmr.msra.gmra.mxu0 %vm412_vm2, %v1199_v27 }
 0x1bd   : > { %v668_v53 = vadd.f32 %v667_v2, %v570_v43  ;;  %923 = vmatmul.msk.f32.vlgmr.msra.gmra.mxu1 %vm412_vm2, %v1217_v34  ;;  %v727_v56 = vpop.f32.mrf.mxu2 }
 0x1be   : > { %v728_v57 = vadd.f32 %v727_v56, %v630_v55 }
 0x1bf   : > { %v739_v54 = vadd.f32 %v731_v52, %v668_v53 }
 0x1c0   : > { %v742_v59 = vadd.f32 %v734_v58, %v728_v57 }
 0x1c1   : > { %758 = vmatpush.msrb.mxu3 %v739_v54 }
 0x1c2   : > { %921 = vmatmul.msk.f32.vlgmr.msrb.gmra.mxu3 %vm412_vm2, %v1196_v24 }
 0x239   : > { %v781_v61 = vpop.f32.mrf.mxu0 }
 0x23a   : > { %v802_v27 = vpop.f32.mrf.mxu1 }
 0x245   : > { %v760_v60 = vpop.f32.mrf.mxu3 }
 0x246   : > { %v763_v62 = vadd.f32 %v760_v60, %v742_v59 }
 0x248   : > { %v784_v63 = vadd.f32 %v781_v61, %v763_v62 }
 0x24a   : > { %v805_v34 = vadd.f32 %v802_v27, %v784_v63 }
 0x24c   : > { %970 = vtanh.f32 %v805_v34 }
 0x252   : > { %v971_v24 = vpop.eup %970 }
 0x253   : > { %807 = vst [vmem:[%s284_s15] sm:$0xff] %v971_v24 }
 0x254   : > { %999 = shalt.err (!%p996_p3)
}
 0x255   : > { %929 = dma.vmem_to_hbm [thread:$0]  (%p1114_p5), %s822_s16, 128, %s824_s18, %s809_s19  }
 0x256 PF: > { %p935_p4 = scmp.ge.s32.totalorder %s1034_s27, 2  ;;  %s835_s17 = sand.u32 1, %s1022_s24  }
 0x257   : > { %s836_s9 = scalar_lea.sflag [#allocation3], %s835_s17 }
 0x258   : > { %p932_p7 = pnand %p935_p4, %p1118_p6 }
 0x25a   : > { %p933_p8 = pneg %p932_p7 }
 0x25c   : > { %1017 = dma.done.wait (%p933_p8), %s836_s9, 128  }
 0x25d   : > { %1019 = vsyncadd (%p933_p8), %s836_s9, 4294967168  ;;  %p17_p9 = scmp.ge.s32.totalorder %s1101_s30, 4   ;;  %s1438_s24 = smov %s1026_s25 }
 0x25e   : > { %s1439_s25 = smov %s1030_s26  ;;  %s1440_s26 = smov %s1112_s10 }
 0x25f   : > { %s1441_s27 = smov %s1101_s30  ;;  %19 = sbr.rel (!%p17_p9) target bundleno = 3 (0x3), region = 88 }
 0x264   :  { %842 = vsyncpa [#allocation3], 1 }
 0x265   :  { %844 = vsyncpa [#allocation3 + $0x1], 1 }

</bundles_post_ra>
